<compile_context>
chip_gen: v7x
topology: tpu7x:2x2x1
jax: 0.10.0
libtpu: 0.0.40
codegen_flags: <defaults>
</compile_context>

<pallas_src>
import jax
import jax.numpy as jnp
from jax import lax
from jax.experimental import pallas as pl
from jax.experimental.pallas import tpu as pltpu


_NC = 2                          # "parallel" core axis (uses both TCs on v7x)
_TILE_BYTES = 2 * 1024 * 1024    # target bytes per (double-buffered) input tile


def _make_kernel(B, N1, TB, nbpc):
    # Python float -> embedded immediate (NOT a captured jax array).
    inv_n = float(1.0 / (N1 - 1))

    def kernel(x_ref, o_ref, acc_ref):
        c = pl.program_id(0)
        b = pl.program_id(1)

        @pl.when(b == 0)
        def _():
            acc_ref[...] = jnp.zeros_like(acc_ref)

        blk = c * nbpc + b                 # logical (unclamped) batch-block id
        rem = B - blk * TB                 # valid rows in this tile (<=0 if OOB)

        x = x_ref[...].astype(jnp.float32)                     # (TB, L), lane-aligned load
        col = lax.broadcasted_iota(jnp.int32, x.shape, 1)
        row = lax.broadcasted_iota(jnp.int32, x.shape, 0)
        mask = ((col % N1) != 0) & (row < rem)                 # drop token 0 + tail/OOB rows

        diff = jnp.where(mask, x - inv_n, 0.0)
        # sublane reduce only; keep lanes — cross-lane reduce deferred to epilogue
        acc_ref[...] += jnp.sum(diff * diff, axis=0, keepdims=True)

        @pl.when(b == nbpc - 1)
        def _():
            s = jnp.sum(acc_ref[...])                          # one XLU reduce per core
            o_ref[...] = jnp.zeros(o_ref.shape, jnp.float32) + s

    return kernel


def hloss(x):
    """x: (B, H, N+1) float array. Returns scalar f32 loss (matches HLoss.forward)."""
    B, H, N1 = x.shape
    L = H * N1
    x2 = x.reshape(B, L)                                       # free: row-major contiguous

    itemsize = x2.dtype.itemsize
    tb = max(1, _TILE_BYTES // max(1, L * itemsize))
    if tb >= B:
        TB = B                                                 # block dim == full dim: always legal
    else:
        TB = min(B, max(8, (tb // 8) * 8))                     # otherwise multiple of 8

    NB = pl.cdiv(B, TB)                                        # total batch blocks
    nbpc = pl.cdiv(NB, _NC)                                    # batch blocks per core

    kernel = _make_kernel(B, N1, TB, nbpc)

    cost = pl.CostEstimate(
        flops=3 * B * H * (N1 - 1),
        transcendentals=0,
        bytes_accessed=B * L * itemsize + _NC * 8 * 128 * 4,
    )

    partial = pl.pallas_call(
        kernel,
        out_shape=jax.ShapeDtypeStruct((_NC, 8, 128), jnp.float32),
        grid_spec=pltpu.PrefetchScalarGridSpec(
            num_scalar_prefetch=0,
            grid=(_NC, nbpc),
            in_specs=[
                pl.BlockSpec(
                    (TB, L),
                    # Clamp the block index so the duplicated/overhanging blocks
                    # on the second core still map to a legal tile; the in-kernel
                    # row mask zeroes their contribution.
                    lambda c, b: (jnp.minimum(c * nbpc + b, NB - 1), 0),
                )
            ],
            out_specs=pl.BlockSpec((1, 8, 128), lambda c, b: (c, 0, 0)),
            scratch_shapes=[pltpu.VMEM((1, L), jnp.float32)],
        ),
        compiler_params=pltpu.CompilerParams(
            dimension_semantics=("parallel", "arbitrary"),
        ),
        cost_estimate=cost,
    )(x2)

    # Finalize in the wrapper: sum per-core partials, mean over batch.
    return jnp.sum(partial[:, 0, 0]) / jnp.float32(B)


def hloss_ref(x):
    """Pure-JAX reference matching the PyTorch module."""
    x = x[:, :, 1:]
    N = x.shape[-1]
    target = jnp.ones_like(x) / N
    loss = (x - target) ** 2
    return loss.sum(axis=(-1, -2)).mean()


if __name__ == "__main__":
    key = jax.random.PRNGKey(0)
    B, H, N1 = 2, 4, 9          # tokens incl. the one dropped by x[:, :, 1:]
    x = jax.random.uniform(key, (B, H, N1), dtype=jnp.float32)

    out = jax.block_until_ready(hloss(x))
    ref = jax.block_until_ready(hloss_ref(x))

    assert jnp.allclose(out, ref, rtol=1e-5, atol=1e-6), (out, ref)
    print("KERNEL_OK")
</pallas_src>

<mosaic_0001>
module attributes {stable_mosaic.version = 11 : i64} {
  func.func @kernel(%arg0: i32, %arg1: i32, %arg2: memref<2x36xf32, #tpu.memory_space<vmem>>, %arg3: memref<1x8x128xf32, #tpu.memory_space<vmem>>, %arg4: memref<1x36xf32, #tpu.memory_space<vmem>>) attributes {dimension_semantics = [#tpu.dimension_semantics<parallel>, #tpu.dimension_semantics<arbitrary>], iteration_bounds = array<i64: 2, 1>, scalar_prefetch = 0 : i64, scratch_operands = 1 : i64, tpu.core_type = #tpu.core_type<tc>, window_params = [{transform_indices = @transform_0, window_bounds = array<i64: 2, 36>}, {transform_indices = @transform_1, window_bounds = array<i64: 1, 8, 128>}]} {
    %c0_i32 = arith.constant 0 : i32
    %0 = arith.cmpi eq, %arg1, %c0_i32 : i32
    %1 = arith.extui %0 : i1 to i32
    %c0_i32_0 = arith.constant 0 : i32
    %2 = arith.cmpi ne, %1, %c0_i32_0 : i32
    scf.if %2 {
      %cst_17 = arith.constant 0.000000e+00 : f32
      %44 = vector.broadcast %cst_17 : f32 to vector<1x36xf32>
      %c0_18 = arith.constant 0 : index
      %c0_19 = arith.constant 0 : index
      %45 = vector.load %arg4[%c0_18, %c0_19] : memref<1x36xf32, #tpu.memory_space<vmem>>, vector<1x36xf32>
      tpu.vector_store %arg4[%c0_18, %c0_19], %44 {strides = array<i32>} : memref<1x36xf32, #tpu.memory_space<vmem>>, vector<1x36xf32>,
    } else {
    }
    %c1_i32 = arith.constant 1 : i32
    %3 = arith.muli %arg0, %c1_i32 : i32
    %4 = arith.addi %3, %arg1 : i32
    %c2_i32 = arith.constant 2 : i32
    %5 = arith.muli %4, %c2_i32 : i32
    %c2_i32_1 = arith.constant 2 : i32
    %6 = arith.subi %c2_i32_1, %5 : i32
    %c0 = arith.constant 0 : index
    %c0_2 = arith.constant 0 : index
    %7 = vector.load %arg2[%c0, %c0_2] : memref<2x36xf32, #tpu.memory_space<vmem>>, vector<2x36xf32>
    %8 = tpu.iota {dimensions = array<i32: 1>} : vector<2x36xi32>
    %9 = tpu.iota {dimensions = array<i32: 0>} : vector<2x36xi32>
    %c9_i32 = arith.constant 9 : i32
    %c0_i32_3 = arith.constant 0 : i32
    %10 = arith.cmpi eq, %c9_i32, %c0_i32_3 : i32
    %c1_i32_4 = arith.constant 1 : i32
    %11 = arith.select %10, %c1_i32_4, %c9_i32 : i32
    %12 = vector.broadcast %11 : i32 to vector<2x36xi32>
    %13 = arith.remsi %8, %12 : vector<2x36xi32>
    %c0_i32_5 = arith.constant 0 : i32
    %14 = vector.broadcast %c0_i32_5 : i32 to vector<2x36xi32>
    %15 = arith.cmpi ne, %13, %14 : vector<2x36xi32>
    %c0_i32_6 = arith.constant 0 : i32
    %16 = vector.broadcast %c0_i32_6 : i32 to vector<2x36xi32>
    %17 = arith.cmpi slt, %13, %16 : vector<2x36xi32>
    %c0_i32_7 = arith.constant 0 : i32
    %18 = arith.cmpi slt, %11, %c0_i32_7 : i32
    %19 = vector.broadcast %18 : i1 to vector<2x36xi1>
    %20 = vector.broadcast %19 : vector<2x36xi1> to vector<2x36xi1>
    %21 = arith.xori %17, %20 : vector<2x36xi1>
    %22 = arith.andi %21, %15 : vector<2x36xi1>
    %23 = vector.broadcast %11 : i32 to vector<2x36xi32>
    %24 = arith.addi %13, %23 : vector<2x36xi32>
    %25 = arith.select %22, %24, %13 : vector<2x36xi1>, vector<2x36xi32>
    %c0_i32_8 = arith.constant 0 : i32
    %26 = vector.broadcast %c0_i32_8 : i32 to vector<2x36xi32>
    %27 = arith.cmpi ne, %25, %26 : vector<2x36xi32>
    %28 = vector.broadcast %6 : i32 to vector<2x36xi32>
    %29 = arith.cmpi slt, %9, %28 : vector<2x36xi32>
    %30 = arith.andi %27, %29 : vector<2x36xi1>
    %cst = arith.constant 1.250000e-01 : f32
    %31 = vector.broadcast %cst : f32 to vector<2x36xf32>
    %32 = arith.subf %7, %31 : vector<2x36xf32>
    %cst_9 = arith.constant 0.000000e+00 : f32
    %33 = vector.broadcast %cst_9 : f32 to vector<2x36xf32>
    %34 = arith.select %30, %32, %33 : vector<2x36xi1>, vector<2x36xf32>
    %c0_10 = arith.constant 0 : index
    %c0_11 = arith.constant 0 : index
    %35 = vector.load %arg4[%c0_10, %c0_11] : memref<1x36xf32, #tpu.memory_space<vmem>>, vector<1x36xf32>
    %36 = arith.mulf %34, %34 : vector<2x36xf32>
    %cst_12 = arith.constant dense<0.000000e+00> : vector<36xf32>
    %37 = vector.multi_reduction <add>, %36, %cst_12 [0] : vector<2x36xf32> to vector<36xf32>
    %38 = vector.shape_cast %37 : vector<36xf32> to vector<1x36xf32>
    %39 = arith.addf %35, %38 : vector<1x36xf32>
    %c0_13 = arith.constant 0 : index
    %c0_14 = arith.constant 0 : index
    %40 = vector.load %arg4[%c0_13, %c0_14] : memref<1x36xf32, #tpu.memory_space<vmem>>, vector<1x36xf32>
    tpu.vector_store %arg4[%c0_13, %c0_14], %39 {strides = array<i32>} : memref<1x36xf32, #tpu.memory_space<vmem>>, vector<1x36xf32>,
    %c0_i32_15 = arith.constant 0 : i32
    %41 = arith.cmpi eq, %arg1, %c0_i32_15 : i32
    %42 = arith.extui %41 : i1 to i32
    %c0_i32_16 = arith.constant 0 : i32
    %43 = arith.cmpi ne, %42, %c0_i32_16 : i32
    scf.if %43 {
      %c0_17 = arith.constant 0 : index
      %c0_18 = arith.constant 0 : index
      %44 = vector.load %arg4[%c0_17, %c0_18] : memref<1x36xf32, #tpu.memory_space<vmem>>, vector<1x36xf32>
      %45 = vector.shape_cast %44 : vector<1x36xf32> to vector<1x1x36xf32>
      %cst_19 = arith.constant dense<0.000000e+00> : vector<1xf32>
      %46 = vector.multi_reduction <add>, %45, %cst_19 [1, 2] : vector<1x1x36xf32> to vector<1xf32>
      %47 = vector.shape_cast %46 : vector<1xf32> to vector<1x1x1xf32>
      %48 = vector.extract %47[0, 0, 0] : f32 from vector<1x1x1xf32>
      %cst_20 = arith.constant 0.000000e+00 : f32
      %49 = vector.broadcast %cst_20 : f32 to vector<1x8x128xf32>
      %50 = vector.broadcast %48 : f32 to vector<1x8x128xf32>
      %51 = arith.addf %49, %50 : vector<1x8x128xf32>
      %c0_21 = arith.constant 0 : index
      %c0_22 = arith.constant 0 : index
      %c0_23 = arith.constant 0 : index
      %52 = vector.load %arg3[%c0_21, %c0_22, %c0_23] : memref<1x8x128xf32, #tpu.memory_space<vmem>>, vector<1x8x128xf32>
      tpu.vector_store %arg3[%c0_21, %c0_22, %c0_23], %51 {strides = array<i32>} : memref<1x8x128xf32, #tpu.memory_space<vmem>>, vector<1x8x128xf32>,
    } else {
    }
    return
  }
  func.func @transform_0(%arg0: i32, %arg1: i32) -> (i32, i32) {
    %c1_i32 = arith.constant 1 : i32
    %0 = arith.muli %arg0, %c1_i32 : i32
    %1 = arith.addi %0, %arg1 : i32
    %c0_i32 = arith.constant 0 : i32
    %2 = arith.minsi %1, %c0_i32 : i32
    %c0_i32_0 = arith.constant 0 : i32
    %c0_i32_1 = arith.constant 0 : i32
    return %2, %c0_i32_0 : i32, i32
  }
  func.func @transform_1(%arg0: i32, %arg1: i32) -> (i32, i32, i32) {
    %c0_i32 = arith.constant 0 : i32
    %c0_i32_0 = arith.constant 0 : i32
    %c0_i32_1 = arith.constant 0 : i32
    return %arg0, %c0_i32, %c0_i32_0 : i32, i32, i32
  }
}

</mosaic_0001>

<bundles_post_ra>
// kernel: tpu_custom_call.1
= control target key start
LH: loop header
LB: loop body
LE: loop exit
PB: predicated region body
PF: predicated region fallthrough
CT: control target
= control target key end

     0   :  { %6 = vsyncpa [#allocation4], 0  ;;  %s741_s0 = inlined_call_operand.hbm [shape: f32[2,36], index: 0, kind: input, shape index: {}]   ;;  %s742_s1 = inlined_call_operand.hbm [shape: f32[2,8,128], index: 1, kind: output, shape index: {}]  }
   0x1   :  { %8 = vsyncpa [#allocation4 + $0x1], 0 }
   0x2   :  { %9 = vsyncpa [#allocation5], 0 }
   0x3   :  { %11 = vsyncpa [#allocation5 + $0x1], 0  ;;  %s568_s6 = smov 0   ;;  %s570_s7 = smov 0  }
   0x4   :  { %s572_s8 = smov 0   ;;  %s574_s9 = smov 0  }
   0x5   :  { %s576_s10 = smov 0   ;;  %s578_s11 = smov 0  }
   0x6   :  { %s580_s12 = smov 0   ;;  %s582_s13 = smov 0  }
   0x7 LB: > { %s314_s14 = sadd.s32 4294967295, %s553_s13   ;;  %s315_s15 = sadd.s32 4294967294, %s553_s13   ;;  %s553_s13 = sphi %s582_s13, %s17_s13   ;;  %s549_s12 = sphi %s580_s12, %s763_s12   ;;  %s545_s11 = sphi %s578_s11, %s762_s11   ;;  %s541_s10 = sphi %s576_s10, %s731_s10   ;;  %s537_s9 = sphi %s574_s9, %s761_s9   ;;  %s533_s8 = sphi %s572_s8, %s760_s8   ;;  %s529_s7 = sphi %s570_s7, %s759_s7   ;;  %s525_s6 = sphi %s568_s6, %s758_s6  }
   0x8   : > { %s29_s16 = sadd.s32 1, %s549_s12  ;;  %p522_p1 = scmp.ne.s32.totalorder %s541_s10, 0 }
   0x9   : > { %p31_p0 = scmp.ge.s32.totalorder %s29_s16, 2  ;;  %p50_p2 = scmp.eq.s32.totalorder %s553_s13, 0 }
   0xa   : > { %p55_p3 = scmp.ne.s32.totalorder %s541_s10, %s537_s9  ;;  %p56_p5 = scmp.eq.s32.totalorder %s314_s14, 0 }
   0xb   : > { %s765_s16 = smov (%p31_p0, %s29_s16), 0  ;;  %p614_p4 = por %p522_p1, %p50_p2 }
   0xc   : > { %p618_p6 = por %p56_p5, %p55_p3  ;;  %s65_s19 = ssub.s32 %s549_s12, %s765_s16 }
   0xd   : > { %p66_p7 = scmp.eq.s32.totalorder %s65_s19, 0  ;;  %s68_s20 = sadd.s32 1, %s533_s8 }
   0xe   : > { %s747_s18 = scalar_select %p618_p6, 1, 0 }
   0xf   : > { %s626_s21 = scalar_select %p66_p7, %s533_s8, %s68_s20  }
  0x10   : > { %p78_p8 = scmp.ne.s32.totalorder %s533_s8, %s529_s7  ;;  %p79_p9 = scmp.eq.s32.totalorder %s314_s14, 1 }
  0x11   : > { %p84_p10 = scmp.ne.s32.totalorder %s529_s7, %s525_s6  ;;  %p85_p11 = scmp.eq.s32.totalorder %s315_s15, 1 }
  0x12   : > { %p632_p12 = por %p79_p9, %p78_p8  ;;  %p345_p1 = scmp.lt.s32.totalorder %s553_s13, 2 }
  0x13   : > { %p637_p0 = por %p85_p11, %p84_p10  ;;  %s555_s24 = smov [#allocation3]  }
  0x14   : > { %s748_s22 = scalar_select %p632_p12, 1, 0 }
  0x15   : > { %s749_s23 = scalar_select %p637_p0, 1, 0 }
  0x16   : > { %s119_s25 = sshll.u32 %s555_s24, 4  ;;  %p644_p2 = pnand %p345_p1, %p614_p4  ;;  %s120_s25 = int_to_ptr.vmem [resolvable:$true] %s119_s25 }
  0x17   : > { %s420_s29 = scalar_lea.hbm %s741_s0, 32 }
  0x18   : > { %s750_s26 = scalar_select %p644_p2, 1, 0 }
  0x19   : > { %p421_p7 = scmp.ne.s32.totalorder %s741_s0, %s420_s29  ;;  %p422_p8 = pneg %p644_p2 }
  0x1a   : > { %p427_p4 = scmp.lt.u32.totalorder %s420_s29, %s420_s29  ;;  %p429_p11 = scmp.lt.u32.totalorder %s420_s29, %s741_s0 }
  0x1b   : > { %p423_p9 = pnand %p422_p8, %p421_p7 }
  0x1c   : > { %p430_p1 = por %p429_p11, %p427_p4 }
  0x1d   : > { %p424_p10 = pneg %p423_p9 }
  0x1f   : > { %p431_p13 = pnand %p430_p1, %p424_p10 }
  0x21   : > { %434 = shalt.err (!%p431_p13)
}
  0x22   : > { %s435_s5 = scalar_lea.vmem %s120_s25, 32  ;;  %s442_s9 = scalar_lea.vmem %s120_s25, 64 }
  0x23   : > { %p436_p3 = scmp.ne.s32.totalorder %s120_s25, %s435_s5  ;;  %p443_p12 = scmp.lt.s32.totalorder %s120_s25, %s120_s25 }
  0x24   : > { %p444_p6 = scmp.lt.s32.totalorder %s442_s9, %s435_s5 }
  0x25   : > { %p438_p5 = pnand %p436_p3, %p422_p8 }
  0x26   : > { %p445_p2 = por %p444_p6, %p443_p12 }
  0x27   : > { %p439_p0 = pneg %p438_p5 }
  0x29   : > { %p446_p7 = pnand %p445_p2, %p439_p0 }
  0x2b   : > { %449 = shalt.err (!%p446_p7)
}
  0x2c   : > { %p751_p9 = scmp.ne.s32.totalorder %s750_s26, 0  ;;  %p752_p10 = scmp.lt.s32.totalorder %s553_s13, 3 }
  0x2d   : > { %p753_p13 = scmp.ge.s32.totalorder %s553_s13, 1 }
  0x2e   : > { %340 = dma.hbm_to_vmem [thread:$0]  (!%p751_p9), %s741_s0, 32, %s120_s25, [#allocation4]  }
  0x2f   : > { %p125_p4 = pnand %p753_p13, %p752_p10 }
  0x30   : > { %s130_s17 = sand.u32 (!%p125_p4), 1, %s541_s10   ;;  %p754_p6 = scmp.ne.s32.totalorder (!%p125_p4), %s747_s18, 0 }
  0x31   : > { %128 = sbr.rel (%p125_p4) target bundleno = 320 (0x140), region = 24  ;;  %s321_s19 = sshll.u32 (!%p125_p4), %s130_s17, 1 }
  0x32   : > { %s131_s20 = scalar_lea.sflag (!%p125_p4), [#allocation4], %s130_s17  ;;  %s134_s24 = scalar_lea.vmem (!%p125_p4), [#allocation3], %s321_s19 }
  0x38   : > { %515 = dma.done.wait (%p754_p6), %s131_s20, 32  }
  0x39   : > { %517 = vsyncadd (%p754_p6), %s131_s20, 4294967264  ;;  %vm160_vm0 = vcmask 286720   ;;  %v166_v0 = vlaneseq  ;;  %v556_v1 = vmov 0.0   ;;  %s323_s25 = sshll.u32 %s545_s11, 1  ;;  %v165_v8 = vld [vmem:[%s134_s24] sm:$0x3] }
  0x3a   : > { %161 = vst.msk [vmem:[#allocation2] sm:$0x1] %vm160_vm0, %v556_v1  ;;  %s164_s26 = ssub.s32 2, %s323_s25  ;;  %v324_v12 = vadd.f32 -0.125, %v165_v8  ;;  %vm194_vm7 = vcmask 287744   ;;  %s150_s18 = sand.u32 1, %s529_s7  }
  0x3b   : > { %v167_v2 = vand.u32 127, %v166_v0  ;;  %v169_v7 = vshrl.u32 %v166_v0, 7  ;;  %v187_v10 = vstv %s164_s26  ;;  %s322_s27 = sshll.u32 %s150_s18, 3  ;;  %s326_s30 = sshll.u32 %s545_s11, 7 }
  0x3c   : > { %s152_s28 = scalar_lea.vmem [#allocation6], %s322_s27  ;;  %s690_s5 = scalar_lea.hbm %s742_s1, %s326_s30 }
  0x3d   : > { %v676_v3 = vmul.u32.u64.low 3817748708, %v167_v2  ;;  %v677_v4 = vmul.u32.u64.high 3817748708, %v167_v2, %v676_v3  ;;  %vm188_vm4 = vcmp.lt.s32.totalorder %v169_v7, %v187_v10  ;;  %s236_s29 = sshll.u32 %s152_s28, 4  ;;  %s223_s9 = scalar_lea.sflag [#allocation5], %s150_s18  ;;  %s685_s29 = int_to_ptr.vmem [resolvable:$true] %s236_s29 }
  0x3e   : > { %s450_s14 = scalar_lea.vmem %s685_s29, 128  ;;  %p755_p0 = scmp.ne.s32.totalorder %s748_s22, 0 }
  0x3f   : > { %v176_v5 = vshrl.u32 %v677_v4, 3  ;;  %p451_p12 = scmp.ne.s32.totalorder %s685_s29, %s450_s14  ;;  %s557_s11 = smov [#allocation6]  }
  0x40   : > { %s454_s15 = sshll.u32 %s557_s11, 4  ;;  %s455_s15 = int_to_ptr.vmem [resolvable:$false] %s454_s15 }
  0x41   : > { %v177_v6 = vmul.u32 9, %v176_v5  ;;  %v192_v22 = vld [vmem:[#allocation2] sm:$0x1]  ;;  %p452_p2 = pnand %p451_p12, %p755_p0  ;;  %s456_s17 = scalar_lea.vmem %s455_s15, 256 }
  0x42   : > { %p457_p5 = scmp.lt.s32.totalorder %s685_s29, %s455_s15  ;;  %p458_p8 = scmp.lt.s32.totalorder %s456_s17, %s450_s14 }
  0x43   : > { %v178_v9 = vsub.s32 %v167_v2, %v177_v6  ;;  %p453_p3 = pneg %p452_p2 }
  0x44   : > { %p459_p11 = por %p458_p8, %p457_p5 }
  0x45   : > { %vm181_vm1 = vcmp.ne.s32.totalorder %v178_v9, 0  ;;  %vm182_vm2 = vcmp.lt.s32.totalorder %v178_v9, 0  ;;  %v184_v11 = vadd.s32 9, %v178_v9 }
  0x46   : > { %vm183_vm3 = vmand %vm182_vm2, %vm181_vm1  ;;  %p460_p1 = pnand %p459_p11, %p453_p3 }
  0x47   : > { %v185_v13 = vsel %vm183_vm3, %v184_v11, %v178_v9 }
  0x48   : > { %vm186_vm5 = vcmp.ne.s32.totalorder %v185_v13, 0 }
  0x49   : > { %vm189_vm6 = vmand %vm186_vm5, %vm188_vm4 }
  0x4a   : > { %v191_v14 = vsel %vm189_vm6, %v324_v12, 0.0 }
  0x4b   : > { %v193_v15 = vmul.f32 %v191_v14, %v191_v14 }
  0x4d   : > { %v195_v16 = vsel %vm194_vm7, %v193_v15, 0.0 }
  0x4e   : > { %v196_v17 = vrot.slane %v195_v16, 4 }
  0x50   : > { %v197_v18 = vadd.f32 %v196_v17, %v195_v16 }
  0x52   : > { %v198_v19 = vrot.slane %v197_v18, 2 }
  0x54   : > { %v199_v20 = vadd.f32 %v198_v19, %v197_v18 }
  0x56   : > { %v200_v21 = vrot.slane %v199_v20, 1 }
  0x58   : > { %v201_v23 = vadd.f32 %v200_v21, %v199_v20 }
  0x5a   : > { %v202_v24 = vadd.f32 %v201_v23, %v192_v22 }
  0x5c   : > { %204 = vst.msk [vmem:[#allocation2] sm:$0x1] %vm160_vm0, %v202_v24 }
  0x63   : > { %v208_v25 = vld [vmem:[#allocation2] sm:$0x1] }
  0x64   : > { %v209_v26 = vsel %vm160_vm0, %v208_v25, 0.0 }
  0x65   : > { %210 = vadd.xlane.f32.xlu0 %v209_v26 }
  0xf2   : > { %v211_v27 = vpop.xlane.xlu0 %210 }
  0xf3   : > { %v212_v28 = vrot.slane %v211_v27, 4 }
  0xf5   : > { %v213_v29 = vadd.f32 %v212_v28, %v211_v27 }
  0xf7   : > { %v214_v30 = vrot.slane %v213_v29, 2 }
  0xf9   : > { %v215_v31 = vadd.f32 %v214_v30, %v213_v29 }
  0xfb   : > { %v216_v32 = vrot.slane %v215_v31, 1 }
  0xfd   : > { %v217_v33 = vadd.f32 %v216_v32, %v215_v31 }
  0xff   : > { %331 = vpush %v217_v33 }
 0x130   : > { %s332_s2 = spop %331 }
 0x131   : > { %v219_v34 = vstv %s332_s2 }
 0x132   : > { %221 = vst [vmem:[%s152_s28] sm:$0xff] %v219_v34 }
 0x133   : > { %463 = shalt.err (!%p460_p1)
}
 0x134   : > { %s464_s19 = scalar_lea.hbm %s690_s5, 128  ;;  %s468_s25 = scalar_lea.hbm %s742_s1, 256 }
 0x135   : > { %p465_p7 = scmp.ne.s32.totalorder %s690_s5, %s464_s19  ;;  %p469_p13 = scmp.lt.u32.totalorder %s690_s5, %s742_s1 }
 0x136   : > { %p470_p4 = scmp.lt.u32.totalorder %s468_s25, %s464_s19  ;;  %p472_p12 = scmp.lt.u32.totalorder %s464_s19, %s690_s5 }
 0x137   : > { %p466_p9 = pnand %p465_p7, %p755_p0 }
 0x138   : > { %p471_p6 = por %p470_p4, %p469_p13 }
 0x139   : > { %p467_p10 = pneg %p466_p9 }
 0x13a   : > { %p473_p2 = por %p472_p12, %p471_p6 }
 0x13c   : > { %p474_p3 = pnand %p473_p2, %p467_p10 }
 0x13e   : > { %477 = shalt.err (!%p474_p3)
}
 0x13f   : > { %335 = dma.vmem_to_hbm [thread:$0]  (%p755_p0), %s685_s29, 128, %s690_s5, %s223_s9  }
 0x140 PF: > { %s248_s27 = sand.u32 1, %s525_s6   ;;  %p756_p5 = scmp.ne.s32.totalorder %s749_s23, 0 }
 0x141   : > { %p757_p8 = scmp.ge.s32.totalorder %s553_s13, 2  ;;  %s249_s28 = scalar_lea.sflag [#allocation5], %s248_s27 }
 0x143   : > { %p342_p11 = pnand %p757_p8, %p756_p5 }
 0x145   : > { %519 = dma.done.wait (!%p342_p11), %s249_s28, 128  }
 0x146   : > { %521 = vsyncadd (!%p342_p11), %s249_s28, 4294967168  ;;  %s17_s13 = sadd.s32 1, %s553_s13   ;;  %s758_s6 = smov %s529_s7 }
 0x147   : > { %p14_p1 = scmp.ge.s32.totalorder %s17_s13, 4   ;;  %s759_s7 = smov %s533_s8 }
 0x148   : > { %s760_s8 = smov %s626_s21  ;;  %s761_s9 = smov %s541_s10 }
 0x149   : > { %s731_s10 = smov 0   ;;  %s762_s11 = smov %s549_s12 }
 0x14a   : > { %s763_s12 = smov %s765_s16  ;;  %16 = sbr.rel (!%p14_p1) target bundleno = 7 (0x7), region = 77 }
 0x151   :  { %254 = vsyncpa [#allocation4], 1 }
 0x152   :  { %256 = vsyncpa [#allocation4 + $0x1], 1 }
 0x153   :  { %257 = vsyncpa [#allocation5], 1 }
 0x154   :  { %259 = vsyncpa [#allocation5 + $0x1], 1 }

</bundles_post_ra>
